<compile_context>
chip_gen: v7x
topology: tpu7x:2x2x1
jax: 0.10.0
libtpu: 0.0.40
codegen_flags: <defaults>
</compile_context>

<pallas_src>
import math
import functools

import jax
import jax.numpy as jnp
from jax import lax
from jax.experimental import pallas as pl
from jax.experimental.pallas import tpu as pltpu


# ----------------------------------------------------------------------------
# Fused kernel: one batch tile.
#   qkv    = x @ Wqkv + bqkv                      (all heads, one matmul;
#                                                  Wq/bq pre-scaled by 1/sqrt(Dh))
#   per h:  probs_h = softmax(q_h k_h^T) ; ctx_h = probs_h v_h
#   concat = [ctx_0 | ctx_1 | ...]                (head-major, == torch.cat)
#   y      = concat @ Wo + bo
# ----------------------------------------------------------------------------
def _mha_fused_kernel(x_ref, wqkv_ref, bqkv_ref, wo_ref, bo_ref,
                      out_ref, *probs_refs, num_heads, head_dim):
    HDh = num_heads * head_dim

    x = x_ref[0].astype(jnp.bfloat16)                                # (S, D)

    # Fused QKV projection for all heads: single MXU pass, N = 3*H*Dh.
    # Q weights/bias were pre-scaled by 1/sqrt(Dh) in the wrapper.
    qkv = jnp.dot(x, wqkv_ref[...],
                  preferred_element_type=jnp.float32) + bqkv_ref[...]  # (S, 3*H*Dh) f32

    # Cast once to bf16 for the MXU score/context matmuls (f32 accumulation).
    qkv_bf = qkv.astype(jnp.bfloat16)
    q = qkv_bf[:, 0 * HDh:1 * HDh]                                   # (S, H*Dh) pre-scaled
    k = qkv_bf[:, 1 * HDh:2 * HDh]
    v = qkv_bf[:, 2 * HDh:3 * HDh]

    ctx_list = []
    for h in range(num_heads):                                       # static unroll, 2-D MXU dots
        qh = q[:, h * head_dim:(h + 1) * head_dim]                   # (S, Dh)
        kh = k[:, h * head_dim:(h + 1) * head_dim]
        vh = v[:, h * head_dim:(h + 1) * head_dim]

        # scores = qh @ kh^T — contract on last dims, no transposed copy
        scores = lax.dot_general(qh, kh, (((1,), (1,)), ((), ())),
                                 preferred_element_type=jnp.float32)  # (S, S) f32

        # numerically stable softmax, kept in f32 (v5e VPU has no bf16)
        m = jnp.max(scores, axis=-1, keepdims=True)
        e = jnp.exp(scores - m)
        denom = jnp.sum(e, axis=-1, keepdims=True)
        probs = e * pl.reciprocal(denom, approx=True)                # (S, S) f32

        # TODO(synk): attention_probs dropout (training mode) not implemented (eval identity).

        ctx = jnp.dot(probs.astype(jnp.bfloat16), vh,
                      preferred_element_type=jnp.float32)            # (S, Dh) f32
        ctx_list.append(ctx)
        if probs_refs:
            probs_refs[0][0, h] = probs.astype(probs_refs[0].dtype)  # per-head write, no stack

    concat = jnp.concatenate(ctx_list, axis=-1).astype(jnp.bfloat16)  # (S, H*Dh), head-major

    # Output projection fused in-kernel (no HBM round trip of concat).
    y = jnp.dot(concat, wo_ref[...],
                preferred_element_type=jnp.float32) + bo_ref[...]    # (S, D) f32
    # TODO(synk): hidden (output) dropout (training mode) not implemented (eval identity).
    out_ref[0] = y.astype(out_ref.dtype)


# ----------------------------------------------------------------------------
# Wrapper
# ----------------------------------------------------------------------------
def multi_head_attention(x, params, *, output_attentions=False):
    """x: [B, S, D] float32. params: dict of stacked per-head weights."""
    B, S, D = x.shape
    wq, wk, wv = params["wq"], params["wk"], params["wv"]            # [H, D, Dh]
    bq, bk, bv = params["bq"], params["bk"], params["bv"]            # [H, 1, Dh]
    wo, bo = params["wo"], params["bo"]                              # [H*Dh, D], [1, D]
    H, _, Dh = wq.shape
    HDh = H * Dh
    inv_sqrt = 1.0 / math.sqrt(Dh)

    # Fuse per-head weights into one head-major slab (tiny one-time param reshape).
    # Fold 1/sqrt(Dh) into the Q slab so the kernel never scales activations.
    def _fuse_w(w):  # [H, D, Dh] -> [D, H*Dh], head-major along last dim
        return w.transpose(1, 0, 2).reshape(D, HDh)

    def _fuse_b(b):  # [H, 1, Dh] -> [1, H*Dh]
        return b.reshape(1, HDh)

    wqkv = jnp.concatenate([_fuse_w(wq) * inv_sqrt, _fuse_w(wk), _fuse_w(wv)],
                           axis=-1).astype(jnp.bfloat16)              # (D, 3*H*Dh) bf16
    bqkv = jnp.concatenate([_fuse_b(bq) * inv_sqrt, _fuse_b(bk), _fuse_b(bv)],
                           axis=-1).astype(jnp.float32)               # (1, 3*H*Dh) f32
    wo_bf = wo.astype(jnp.bfloat16)                                   # (H*Dh, D) bf16
    bo_f32 = bo.astype(jnp.float32)                                   # (1, D) f32

    in_specs = [
        pl.BlockSpec((1, S, D), lambda b: (b, 0, 0)),      # x tile (per batch)
        pl.BlockSpec((D, 3 * HDh), lambda b: (0, 0)),      # fused QKV weights (resident)
        pl.BlockSpec((1, 3 * HDh), lambda b: (0, 0)),      # fused QKV bias
        pl.BlockSpec((HDh, D), lambda b: (0, 0)),          # output projection weight
        pl.BlockSpec((1, D), lambda b: (0, 0)),            # output projection bias
    ]
    out_specs = [pl.BlockSpec((1, S, D), lambda b: (b, 0, 0))]       # lane-dense output
    out_shapes = [jax.ShapeDtypeStruct((B, S, D), x.dtype)]
    if output_attentions:
        out_specs.append(pl.BlockSpec((1, H, S, S), lambda b: (b, 0, 0, 0)))
        out_shapes.append(jax.ShapeDtypeStruct((B, H, S, S), jnp.float32))

    outs = pl.pallas_call(
        functools.partial(_mha_fused_kernel, num_heads=H, head_dim=Dh),
        grid=(B,),
        in_specs=in_specs,
        out_specs=out_specs,
        out_shape=out_shapes,
        compiler_params=pltpu.CompilerParams(
            dimension_semantics=("parallel",),
            vmem_limit_bytes=64 << 20),
    )(x, wqkv, bqkv, wo_bf, bo_f32)

    if output_attentions:
        return outs[0], outs[1]
    return outs[0], None


# ----------------------------------------------------------------------------
# Pure-JAX f32 reference for correctness check
# ----------------------------------------------------------------------------
def reference(x, params):
    wq, wk, wv = params["wq"], params["wk"], params["wv"]
    bq, bk, bv = params["bq"], params["bk"], params["bv"]
    wo, bo = params["wo"], params["bo"]
    H, D, Dh = wq.shape
    B, S, _ = x.shape

    q = jnp.einsum("bsd,hde->bhse", x, wq) + bq[:, None, 0, :]
    k = jnp.einsum("bsd,hde->bhse", x, wk) + bk[:, None, 0, :]
    v = jnp.einsum("bsd,hde->bhse", x, wv) + bv[:, None, 0, :]
    scores = jnp.einsum("bhqe,bhke->bhqk", q, k) / math.sqrt(Dh)
    probs = jax.nn.softmax(scores, axis=-1)
    out = jnp.einsum("bhqk,bhke->bhqe", probs, v)
    concat = out.transpose(0, 2, 1, 3).reshape(B, S, H * Dh)
    proj = concat @ wo + bo[0]
    return proj, probs


# ----------------------------------------------------------------------------
def init_params(key, hidden_size, num_heads):
    head_dim = hidden_size // num_heads
    all_head = num_heads * head_dim
    ks = jax.random.split(key, 8)
    scale = 0.02
    return {
        "wq": scale * jax.random.normal(ks[0], (num_heads, hidden_size, head_dim), jnp.float32),
        "wk": scale * jax.random.normal(ks[1], (num_heads, hidden_size, head_dim), jnp.float32),
        "wv": scale * jax.random.normal(ks[2], (num_heads, hidden_size, head_dim), jnp.float32),
        "bq": scale * jax.random.normal(ks[3], (num_heads, 1, head_dim), jnp.float32),
        "bk": scale * jax.random.normal(ks[4], (num_heads, 1, head_dim), jnp.float32),
        "bv": scale * jax.random.normal(ks[5], (num_heads, 1, head_dim), jnp.float32),
        "wo": scale * jax.random.normal(ks[6], (all_head, hidden_size), jnp.float32),
        "bo": scale * jax.random.normal(ks[7], (1, hidden_size), jnp.float32),
    }


if __name__ == "__main__":
    B, S, HIDDEN, HEADS = 2, 8, 32, 4   # small shapes consistent with the module

    key = jax.random.PRNGKey(0)
    k_x, k_p = jax.random.split(key)
    x = jax.random.normal(k_x, (B, S, HIDDEN), jnp.float32)
    params = init_params(k_p, HIDDEN, HEADS)

    # Variant with attention probs returned
    out, probs = multi_head_attention(x, params, output_attentions=True)
    out = jax.block_until_ready(out)
    probs = jax.block_until_ready(probs)

    # Variant without probs (no S x S HBM writeback at all)
    out_noattn, none_probs = multi_head_attention(x, params, output_attentions=False)
    out_noattn = jax.block_until_ready(out_noattn)

    ref_out, ref_probs = reference(x, params)
    assert out.shape == (B, S, HIDDEN)
    assert probs.shape == (B, HEADS, S, S)
    assert none_probs is None
    # bf16 matmul operands (f32 accumulation) vs f32 reference -> relaxed tolerances
    assert jnp.allclose(out, ref_out, atol=1e-2, rtol=1e-2)
    assert jnp.allclose(probs, ref_probs, atol=1e-2, rtol=1e-2)
    assert jnp.allclose(out_noattn, ref_out, atol=1e-2, rtol=1e-2)

    print("KERNEL_OK")
</pallas_src>

<mosaic_0001>
module attributes {stable_mosaic.version = 11 : i64} {
  func.func @_mha_fused_kernel(%arg0: i32, %arg1: memref<1x8x32xf32, #tpu.memory_space<vmem>>, %arg2: memref<32x96xbf16, #tpu.memory_space<vmem>>, %arg3: memref<1x96xf32, #tpu.memory_space<vmem>>, %arg4: memref<32x32xbf16, #tpu.memory_space<vmem>>, %arg5: memref<1x32xf32, #tpu.memory_space<vmem>>, %arg6: memref<1x8x32xf32, #tpu.memory_space<vmem>>, %arg7: memref<1x4x8x8xf32, #tpu.memory_space<vmem>>) attributes {dimension_semantics = [#tpu.dimension_semantics<parallel>], iteration_bounds = array<i64: 2>, scalar_prefetch = 0 : i64, scratch_operands = 0 : i64, tpu.core_type = #tpu.core_type<tc>, window_params = [{transform_indices = @transform_0, window_bounds = array<i64: 1, 8, 32>}, {pipeline_mode = #tpu.pipeline_mode<synchronous>, transform_indices = @transform_1, window_bounds = array<i64: 32, 96>}, {pipeline_mode = #tpu.pipeline_mode<synchronous>, transform_indices = @transform_2, window_bounds = array<i64: 1, 96>}, {pipeline_mode = #tpu.pipeline_mode<synchronous>, transform_indices = @transform_3, window_bounds = array<i64: 32, 32>}, {pipeline_mode = #tpu.pipeline_mode<synchronous>, transform_indices = @transform_4, window_bounds = array<i64: 1, 32>}, {transform_indices = @transform_5, window_bounds = array<i64: 1, 8, 32>}, {transform_indices = @transform_6, window_bounds = array<i64: 1, 4, 8, 8>}]} {
    %c0 = arith.constant 0 : index
    %c0_0 = arith.constant 0 : index
    %c0_1 = arith.constant 0 : index
    %0 = vector.load %arg1[%c0, %c0_0, %c0_1] : memref<1x8x32xf32, #tpu.memory_space<vmem>>, vector<1x8x32xf32>
    %1 = vector.shape_cast %0 : vector<1x8x32xf32> to vector<8x32xf32>
    %2 = arith.truncf %1 : vector<8x32xf32> to vector<8x32xbf16>
    %c0_2 = arith.constant 0 : index
    %c0_3 = arith.constant 0 : index
    %3 = vector.load %arg2[%c0_2, %c0_3] : memref<32x96xbf16, #tpu.memory_space<vmem>>, vector<32x96xbf16>
    %cst = arith.constant dense<0.000000e+00> : vector<8x96xf32>
    %4 = tpu.matmul %2, %3, %cst {dimension_numbers = #tpu.dot_dimension_numbers<[1], [0], [0], [1], [0, 0, 1, 1], [], []>} : vector<8x32xbf16>, vector<32x96xbf16>, vector<8x96xf32> -> vector<8x96xf32>
    %c0_4 = arith.constant 0 : index
    %c0_5 = arith.constant 0 : index
    %5 = vector.load %arg3[%c0_4, %c0_5] : memref<1x96xf32, #tpu.memory_space<vmem>>, vector<1x96xf32>
    %6 = vector.broadcast %5 : vector<1x96xf32> to vector<8x96xf32>
    %7 = arith.addf %4, %6 : vector<8x96xf32>
    %8 = arith.truncf %7 : vector<8x96xf32> to vector<8x96xbf16>
    %9 = vector.extract_strided_slice %8 {offsets = [0, 0], sizes = [8, 32], strides = [1, 1]} : vector<8x96xbf16> to vector<8x32xbf16>
    %10 = vector.extract_strided_slice %8 {offsets = [0, 32], sizes = [8, 32], strides = [1, 1]} : vector<8x96xbf16> to vector<8x32xbf16>
    %11 = vector.extract_strided_slice %8 {offsets = [0, 64], sizes = [8, 32], strides = [1, 1]} : vector<8x96xbf16> to vector<8x32xbf16>
    %12 = vector.extract_strided_slice %9 {offsets = [0, 0], sizes = [8, 8], strides = [1, 1]} : vector<8x32xbf16> to vector<8x8xbf16>
    %13 = vector.extract_strided_slice %10 {offsets = [0, 0], sizes = [8, 8], strides = [1, 1]} : vector<8x32xbf16> to vector<8x8xbf16>
    %14 = vector.extract_strided_slice %11 {offsets = [0, 0], sizes = [8, 8], strides = [1, 1]} : vector<8x32xbf16> to vector<8x8xbf16>
    %cst_6 = arith.constant dense<0.000000e+00> : vector<8x8xf32>
    %15 = tpu.matmul %12, %13, %cst_6 {dimension_numbers = #tpu.dot_dimension_numbers<[1], [1], [0], [0], [0, 0, 1, 0], [], []>} : vector<8x8xbf16>, vector<8x8xbf16>, vector<8x8xf32> -> vector<8x8xf32>
    %cst_7 = arith.constant dense<0xFF800000> : vector<8xf32>
    %16 = vector.multi_reduction <maximumf>, %15, %cst_7 [1] : vector<8x8xf32> to vector<8xf32>
    %17 = vector.shape_cast %16 : vector<8xf32> to vector<8x1xf32>
    %18 = vector.broadcast %17 : vector<8x1xf32> to vector<8x8xf32>
    %19 = arith.subf %15, %18 : vector<8x8xf32>
    %20 = math.exp %19 : vector<8x8xf32>
    %cst_8 = arith.constant dense<0.000000e+00> : vector<8xf32>
    %21 = vector.multi_reduction <add>, %20, %cst_8 [1] : vector<8x8xf32> to vector<8xf32>
    %22 = vector.shape_cast %21 : vector<8xf32> to vector<8x1xf32>
    %23 = tpu.reciprocal %22 {approx = true} : vector<8x1xf32> -> vector<8x1xf32>
    %24 = vector.broadcast %23 : vector<8x1xf32> to vector<8x8xf32>
    %25 = arith.mulf %20, %24 : vector<8x8xf32>
    %26 = arith.truncf %25 : vector<8x8xf32> to vector<8x8xbf16>
    %cst_9 = arith.constant dense<0.000000e+00> : vector<8x8xf32>
    %27 = tpu.matmul %26, %14, %cst_9 {dimension_numbers = #tpu.dot_dimension_numbers<[1], [0], [0], [1], [0, 0, 1, 1], [], []>} : vector<8x8xbf16>, vector<8x8xbf16>, vector<8x8xf32> -> vector<8x8xf32>
    %c0_10 = arith.constant 0 : index
    %c0_11 = arith.constant 0 : index
    %c0_12 = arith.constant 0 : index
    %c0_13 = arith.constant 0 : index
    %28 = vector.load %arg7[%c0_10, %c0_11, %c0_12, %c0_13] : memref<1x4x8x8xf32, #tpu.memory_space<vmem>>, vector<1x1x8x8xf32>
    %29 = vector.shape_cast %28 : vector<1x1x8x8xf32> to vector<8x8xf32>
    %30 = vector.shape_cast %25 : vector<8x8xf32> to vector<1x1x8x8xf32>
    tpu.vector_store %arg7[%c0_10, %c0_11, %c0_12, %c0_13], %30 {strides = array<i32>} : memref<1x4x8x8xf32, #tpu.memory_space<vmem>>, vector<1x1x8x8xf32>,
    %31 = vector.extract_strided_slice %9 {offsets = [0, 8], sizes = [8, 8], strides = [1, 1]} : vector<8x32xbf16> to vector<8x8xbf16>
    %32 = vector.extract_strided_slice %10 {offsets = [0, 8], sizes = [8, 8], strides = [1, 1]} : vector<8x32xbf16> to vector<8x8xbf16>
    %33 = vector.extract_strided_slice %11 {offsets = [0, 8], sizes = [8, 8], strides = [1, 1]} : vector<8x32xbf16> to vector<8x8xbf16>
    %cst_14 = arith.constant dense<0.000000e+00> : vector<8x8xf32>
    %34 = tpu.matmul %31, %32, %cst_14 {dimension_numbers = #tpu.dot_dimension_numbers<[1], [1], [0], [0], [0, 0, 1, 0], [], []>} : vector<8x8xbf16>, vector<8x8xbf16>, vector<8x8xf32> -> vector<8x8xf32>
    %cst_15 = arith.constant dense<0xFF800000> : vector<8xf32>
    %35 = vector.multi_reduction <maximumf>, %34, %cst_15 [1] : vector<8x8xf32> to vector<8xf32>
    %36 = vector.shape_cast %35 : vector<8xf32> to vector<8x1xf32>
    %37 = vector.broadcast %36 : vector<8x1xf32> to vector<8x8xf32>
    %38 = arith.subf %34, %37 : vector<8x8xf32>
    %39 = math.exp %38 : vector<8x8xf32>
    %cst_16 = arith.constant dense<0.000000e+00> : vector<8xf32>
    %40 = vector.multi_reduction <add>, %39, %cst_16 [1] : vector<8x8xf32> to vector<8xf32>
    %41 = vector.shape_cast %40 : vector<8xf32> to vector<8x1xf32>
    %42 = tpu.reciprocal %41 {approx = true} : vector<8x1xf32> -> vector<8x1xf32>
    %43 = vector.broadcast %42 : vector<8x1xf32> to vector<8x8xf32>
    %44 = arith.mulf %39, %43 : vector<8x8xf32>
    %45 = arith.truncf %44 : vector<8x8xf32> to vector<8x8xbf16>
    %cst_17 = arith.constant dense<0.000000e+00> : vector<8x8xf32>
    %46 = tpu.matmul %45, %33, %cst_17 {dimension_numbers = #tpu.dot_dimension_numbers<[1], [0], [0], [1], [0, 0, 1, 1], [], []>} : vector<8x8xbf16>, vector<8x8xbf16>, vector<8x8xf32> -> vector<8x8xf32>
    %c0_18 = arith.constant 0 : index
    %c1 = arith.constant 1 : index
    %c0_19 = arith.constant 0 : index
    %c0_20 = arith.constant 0 : index
    %47 = vector.load %arg7[%c0_18, %c1, %c0_19, %c0_20] : memref<1x4x8x8xf32, #tpu.memory_space<vmem>>, vector<1x1x8x8xf32>
    %48 = vector.shape_cast %47 : vector<1x1x8x8xf32> to vector<8x8xf32>
    %49 = vector.shape_cast %44 : vector<8x8xf32> to vector<1x1x8x8xf32>
    tpu.vector_store %arg7[%c0_18, %c1, %c0_19, %c0_20], %49 {strides = array<i32>} : memref<1x4x8x8xf32, #tpu.memory_space<vmem>>, vector<1x1x8x8xf32>,
    %50 = vector.extract_strided_slice %9 {offsets = [0, 16], sizes = [8, 8], strides = [1, 1]} : vector<8x32xbf16> to vector<8x8xbf16>
    %51 = vector.extract_strided_slice %10 {offsets = [0, 16], sizes = [8, 8], strides = [1, 1]} : vector<8x32xbf16> to vector<8x8xbf16>
    %52 = vector.extract_strided_slice %11 {offsets = [0, 16], sizes = [8, 8], strides = [1, 1]} : vector<8x32xbf16> to vector<8x8xbf16>
    %cst_21 = arith.constant dense<0.000000e+00> : vector<8x8xf32>
    %53 = tpu.matmul %50, %51, %cst_21 {dimension_numbers = #tpu.dot_dimension_numbers<[1], [1], [0], [0], [0, 0, 1, 0], [], []>} : vector<8x8xbf16>, vector<8x8xbf16>, vector<8x8xf32> -> vector<8x8xf32>
    %cst_22 = arith.constant dense<0xFF800000> : vector<8xf32>
    %54 = vector.multi_reduction <maximumf>, %53, %cst_22 [1] : vector<8x8xf32> to vector<8xf32>
    %55 = vector.shape_cast %54 : vector<8xf32> to vector<8x1xf32>
    %56 = vector.broadcast %55 : vector<8x1xf32> to vector<8x8xf32>
    %57 = arith.subf %53, %56 : vector<8x8xf32>
    %58 = math.exp %57 : vector<8x8xf32>
    %cst_23 = arith.constant dense<0.000000e+00> : vector<8xf32>
    %59 = vector.multi_reduction <add>, %58, %cst_23 [1] : vector<8x8xf32> to vector<8xf32>
    %60 = vector.shape_cast %59 : vector<8xf32> to vector<8x1xf32>
    %61 = tpu.reciprocal %60 {approx = true} : vector<8x1xf32> -> vector<8x1xf32>
    %62 = vector.broadcast %61 : vector<8x1xf32> to vector<8x8xf32>
    %63 = arith.mulf %58, %62 : vector<8x8xf32>
    %64 = arith.truncf %63 : vector<8x8xf32> to vector<8x8xbf16>
    %cst_24 = arith.constant dense<0.000000e+00> : vector<8x8xf32>
    %65 = tpu.matmul %64, %52, %cst_24 {dimension_numbers = #tpu.dot_dimension_numbers<[1], [0], [0], [1], [0, 0, 1, 1], [], []>} : vector<8x8xbf16>, vector<8x8xbf16>, vector<8x8xf32> -> vector<8x8xf32>
    %c0_25 = arith.constant 0 : index
    %c2 = arith.constant 2 : index
    %c0_26 = arith.constant 0 : index
    %c0_27 = arith.constant 0 : index
    %66 = vector.load %arg7[%c0_25, %c2, %c0_26, %c0_27] : memref<1x4x8x8xf32, #tpu.memory_space<vmem>>, vector<1x1x8x8xf32>
    %67 = vector.shape_cast %66 : vector<1x1x8x8xf32> to vector<8x8xf32>
    %68 = vector.shape_cast %63 : vector<8x8xf32> to vector<1x1x8x8xf32>
    tpu.vector_store %arg7[%c0_25, %c2, %c0_26, %c0_27], %68 {strides = array<i32>} : memref<1x4x8x8xf32, #tpu.memory_space<vmem>>, vector<1x1x8x8xf32>,
    %69 = vector.extract_strided_slice %9 {offsets = [0, 24], sizes = [8, 8], strides = [1, 1]} : vector<8x32xbf16> to vector<8x8xbf16>
    %70 = vector.extract_strided_slice %10 {offsets = [0, 24], sizes = [8, 8], strides = [1, 1]} : vector<8x32xbf16> to vector<8x8xbf16>
    %71 = vector.extract_strided_slice %11 {offsets = [0, 24], sizes = [8, 8], strides = [1, 1]} : vector<8x32xbf16> to vector<8x8xbf16>
    %cst_28 = arith.constant dense<0.000000e+00> : vector<8x8xf32>
    %72 = tpu.matmul %69, %70, %cst_28 {dimension_numbers = #tpu.dot_dimension_numbers<[1], [1], [0], [0], [0, 0, 1, 0], [], []>} : vector<8x8xbf16>, vector<8x8xbf16>, vector<8x8xf32> -> vector<8x8xf32>
    %cst_29 = arith.constant dense<0xFF800000> : vector<8xf32>
    %73 = vector.multi_reduction <maximumf>, %72, %cst_29 [1] : vector<8x8xf32> to vector<8xf32>
    %74 = vector.shape_cast %73 : vector<8xf32> to vector<8x1xf32>
    %75 = vector.broadcast %74 : vector<8x1xf32> to vector<8x8xf32>
    %76 = arith.subf %72, %75 : vector<8x8xf32>
    %77 = math.exp %76 : vector<8x8xf32>
    %cst_30 = arith.constant dense<0.000000e+00> : vector<8xf32>
    %78 = vector.multi_reduction <add>, %77, %cst_30 [1] : vector<8x8xf32> to vector<8xf32>
    %79 = vector.shape_cast %78 : vector<8xf32> to vector<8x1xf32>
    %80 = tpu.reciprocal %79 {approx = true} : vector<8x1xf32> -> vector<8x1xf32>
    %81 = vector.broadcast %80 : vector<8x1xf32> to vector<8x8xf32>
    %82 = arith.mulf %77, %81 : vector<8x8xf32>
    %83 = arith.truncf %82 : vector<8x8xf32> to vector<8x8xbf16>
    %cst_31 = arith.constant dense<0.000000e+00> : vector<8x8xf32>
    %84 = tpu.matmul %83, %71, %cst_31 {dimension_numbers = #tpu.dot_dimension_numbers<[1], [0], [0], [1], [0, 0, 1, 1], [], []>} : vector<8x8xbf16>, vector<8x8xbf16>, vector<8x8xf32> -> vector<8x8xf32>
    %c0_32 = arith.constant 0 : index
    %c3 = arith.constant 3 : index
    %c0_33 = arith.constant 0 : index
    %c0_34 = arith.constant 0 : index
    %85 = vector.load %arg7[%c0_32, %c3, %c0_33, %c0_34] : memref<1x4x8x8xf32, #tpu.memory_space<vmem>>, vector<1x1x8x8xf32>
    %86 = vector.shape_cast %85 : vector<1x1x8x8xf32> to vector<8x8xf32>
    %87 = vector.shape_cast %82 : vector<8x8xf32> to vector<1x1x8x8xf32>
    tpu.vector_store %arg7[%c0_32, %c3, %c0_33, %c0_34], %87 {strides = array<i32>} : memref<1x4x8x8xf32, #tpu.memory_space<vmem>>, vector<1x1x8x8xf32>,
    %88 = tpu.concatenate %27, %46, %65, %84 in 1 : vector<8x8xf32>, vector<8x8xf32>, vector<8x8xf32>, vector<8x8xf32> -> vector<8x32xf32>
    %89 = arith.truncf %88 : vector<8x32xf32> to vector<8x32xbf16>
    %c0_35 = arith.constant 0 : index
    %c0_36 = arith.constant 0 : index
    %90 = vector.load %arg4[%c0_35, %c0_36] : memref<32x32xbf16, #tpu.memory_space<vmem>>, vector<32x32xbf16>
    %cst_37 = arith.constant dense<0.000000e+00> : vector<8x32xf32>
    %91 = tpu.matmul %89, %90, %cst_37 {dimension_numbers = #tpu.dot_dimension_numbers<[1], [0], [0], [1], [0, 0, 1, 1], [], []>} : vector<8x32xbf16>, vector<32x32xbf16>, vector<8x32xf32> -> vector<8x32xf32>
    %c0_38 = arith.constant 0 : index
    %c0_39 = arith.constant 0 : index
    %92 = vector.load %arg5[%c0_38, %c0_39] : memref<1x32xf32, #tpu.memory_space<vmem>>, vector<1x32xf32>
    %93 = vector.broadcast %92 : vector<1x32xf32> to vector<8x32xf32>
    %94 = arith.addf %91, %93 : vector<8x32xf32>
    %c0_40 = arith.constant 0 : index
    %c0_41 = arith.constant 0 : index
    %c0_42 = arith.constant 0 : index
    %95 = vector.load %arg6[%c0_40, %c0_41, %c0_42] : memref<1x8x32xf32, #tpu.memory_space<vmem>>, vector<1x8x32xf32>
    %96 = vector.shape_cast %95 : vector<1x8x32xf32> to vector<8x32xf32>
    %97 = vector.shape_cast %94 : vector<8x32xf32> to vector<1x8x32xf32>
    tpu.vector_store %arg6[%c0_40, %c0_41, %c0_42], %97 {strides = array<i32>} : memref<1x8x32xf32, #tpu.memory_space<vmem>>, vector<1x8x32xf32>,
    return
  }
  func.func @transform_0(%arg0: i32) -> (i32, i32, i32) {
    %c0_i32 = arith.constant 0 : i32
    %c0_i32_0 = arith.constant 0 : i32
    %c0_i32_1 = arith.constant 0 : i32
    return %arg0, %c0_i32, %c0_i32_0 : i32, i32, i32
  }
  func.func @transform_1(%arg0: i32) -> (i32, i32) {
    %c0_i32 = arith.constant 0 : i32
    %c0_i32_0 = arith.constant 0 : i32
    %c0_i32_1 = arith.constant 0 : i32
    return %c0_i32, %c0_i32_0 : i32, i32
  }
  func.func @transform_2(%arg0: i32) -> (i32, i32) {
    %c0_i32 = arith.constant 0 : i32
    %c0_i32_0 = arith.constant 0 : i32
    %c0_i32_1 = arith.constant 0 : i32
    return %c0_i32, %c0_i32_0 : i32, i32
  }
  func.func @transform_3(%arg0: i32) -> (i32, i32) {
    %c0_i32 = arith.constant 0 : i32
    %c0_i32_0 = arith.constant 0 : i32
    %c0_i32_1 = arith.constant 0 : i32
    return %c0_i32, %c0_i32_0 : i32, i32
  }
  func.func @transform_4(%arg0: i32) -> (i32, i32) {
    %c0_i32 = arith.constant 0 : i32
    %c0_i32_0 = arith.constant 0 : i32
    %c0_i32_1 = arith.constant 0 : i32
    return %c0_i32, %c0_i32_0 : i32, i32
  }
  func.func @transform_5(%arg0: i32) -> (i32, i32, i32) {
    %c0_i32 = arith.constant 0 : i32
    %c0_i32_0 = arith.constant 0 : i32
    %c0_i32_1 = arith.constant 0 : i32
    return %arg0, %c0_i32, %c0_i32_0 : i32, i32, i32
  }
  func.func @transform_6(%arg0: i32) -> (i32, i32, i32, i32) {
    %c0_i32 = arith.constant 0 : i32
    %c0_i32_0 = arith.constant 0 : i32
    %c0_i32_1 = arith.constant 0 : i32
    %c0_i32_2 = arith.constant 0 : i32
    return %arg0, %c0_i32, %c0_i32_0, %c0_i32_1 : i32, i32, i32, i32
  }
}

</mosaic_0001>

<bundles_post_ra>
// kernel: tpu_custom_call.1
= control target key start
LH: loop header
LB: loop body
LE: loop exit
PB: predicated region body
PF: predicated region fallthrough
CT: control target
= control target key end

     0   :  { %12 = vsyncpa [#allocation3], 0  ;;  %s2088_s0 = inlined_call_operand.hbm [shape: f32[2,8,32], index: 0, kind: input, shape index: {}]   ;;  %s2089_s1 = inlined_call_operand.hbm [shape: bf16[32,96], index: 1, kind: input, shape index: {}]   ;;  %s2090_s2 = inlined_call_operand.hbm [shape: f32[1,96], index: 2, kind: input, shape index: {}]   ;;  %s2091_s3 = inlined_call_operand.hbm [shape: bf16[32,32], index: 3, kind: input, shape index: {}]   ;;  %s2092_s4 = inlined_call_operand.hbm [shape: f32[1,32], index: 4, kind: input, shape index: {}]   ;;  %s2093_s5 = inlined_call_operand.hbm [shape: f32[2,8,32], index: 5, kind: output, shape index: {0}]   ;;  %s2094_s6 = inlined_call_operand.hbm [shape: f32[2,4,8,8], index: 6, kind: output, shape index: {1}]  }
   0x1   :  { %14 = vsyncpa [#allocation3 + $0x1], 0 }
   0x2   :  { %15 = vsyncpa [#allocation6], 0 }
   0x3   :  { %16 = vsyncpa [#allocation9], 0 }
   0x4   :  { %17 = vsyncpa [#allocation4], 0 }
   0x5   :  { %19 = vsyncpa [#allocation4 + $0x1], 0 }
   0x6   :  { %20 = vsyncpa [#allocation13], 0 }
   0x7   :  { %22 = vsyncpa [#allocation13 + $0x1], 0  ;;  %s1683_s21 = smov 0   ;;  %s1685_s22 = smov 0  }
   0x8   :  { %s1687_s23 = smov 0   ;;  %s1689_s24 = smov 0  }
   0x9 LB: > { %s1622_s25 = smov [#allocation5]   ;;  %s1704_s27 = sadd.s32 4294967295, %s1620_s24   ;;  %s1620_s24 = sphi %s1689_s24, %s2118_s24   ;;  %s1616_s23 = sphi %s1687_s23, %s2117_s23   ;;  %s1612_s22 = sphi %s1685_s22, %s2116_s22   ;;  %s1608_s21 = sphi %s1683_s21, %s2115_s21  }
   0xa   : > { %s207_s26 = sshll.u32 %s1622_s25, 4  ;;  %p1112_p0 = scmp.ge.s32.totalorder %s1620_s24, 1  ;;  %s1709_s26 = int_to_ptr.vmem [resolvable:$true] %s207_s26 }
   0xb   : > { %p2095_p1 = scmp.eq.s32.totalorder %s1704_s27, 0  ;;  %p195_p2 = scmp.lt.s32.totalorder %s1620_s24, 3 }
   0xc   : > { %s1623_s29 = smov [#allocation8]   ;;  %s1624_s8 = smov [#allocation7]  }
   0xd   : > { %p1711_p3 = pnand %p1112_p0, %p195_p2  ;;  %s231_s30 = sshll.u32 %s1623_s29, 4  ;;  %s1724_s30 = int_to_ptr.vmem [resolvable:$true] %s231_s30 }
   0xe   : > { %s221_s9 = sshll.u32 %s1624_s8, 4  ;;  %s1372_s12 = scalar_lea.hbm %s2089_s1, 256  ;;  %s1726_s9 = int_to_ptr.vmem [resolvable:$true] %s221_s9 }
   0xf   : > { %s2098_s28 = scalar_select %p1711_p3, 1, 0 }
  0x10   : > { %p1263_p5 = pneg %p1711_p3  ;;  %p1373_p7 = scmp.ne.s32.totalorder %s2089_s1, %s1372_s12 }
  0x11   : > { %p1379_p11 = scmp.lt.u32.totalorder %s1372_s12, %s2089_s1 }
  0x12   : > { %p1720_p6 = pnand %p1263_p5, %p2095_p1 }
  0x14   : > { %p1736_p8 = pneg %p1720_p6 }
  0x16   : > { %p1375_p9 = pnand %p1736_p8, %p1373_p7 }
  0x18   : > { %p1376_p10 = pneg %p1375_p9 }
  0x1a   : > { %p1381_p12 = pnand %p1379_p11, %p1376_p10 }
  0x1c   : > { %1384 = shalt.err (!%p1381_p12)
}
  0x1d   : > { %s1385_s18 = scalar_lea.vmem %s1709_s26, 256  ;;  %p1393_p5 = scmp.lt.s32.totalorder %s1709_s26, %s1709_s26 }
  0x1e   : > { %p1386_p13 = scmp.ne.s32.totalorder %s1709_s26, %s1385_s18  ;;  %p1394_p4 = scmp.lt.s32.totalorder %s1385_s18, %s1385_s18 }
  0x20   : > { %p1388_p0 = pnand %p1386_p13, %p1736_p8  ;;  %p1395_p7 = por %p1394_p4, %p1393_p5 }
  0x22   : > { %p1389_p2 = pneg %p1388_p0 }
  0x24   : > { %p1396_p9 = pnand %p1395_p7, %p1389_p2 }
  0x26   : > { %1399 = shalt.err (!%p1396_p9)
}
  0x27   : > { %s1625_s19 = smov 64   ;;  %s1626_s20 = smov 4  }
  0x28   : > { %1266 = dma.hbm_to_vmem [thread:$0]  (!%p1720_p6), %s2089_s1, 256, %s1709_s26, [#allocation6], %s1625_s19, %s1625_s19, %s1626_s20  }
  0x29   : > { %s1400_s11 = scalar_lea.hbm %s2091_s3, 256 }
  0x2a   : > { %p1401_p4 = scmp.ne.s32.totalorder %s2091_s3, %s1400_s11  ;;  %p1407_p12 = scmp.lt.u32.totalorder %s1400_s11, %s2091_s3 }
  0x2c   : > { %p1403_p10 = pnand %p1401_p4, %p1736_p8 }
  0x2e   : > { %p1404_p11 = pneg %p1403_p10 }
  0x30   : > { %p1409_p13 = pnand %p1407_p12, %p1404_p11 }
  0x32   : > { %1412 = shalt.err (!%p1409_p13)
}
  0x33   : > { %s1413_s26 = scalar_lea.vmem %s1724_s30, 256  ;;  %p1421_p7 = scmp.lt.s32.totalorder %s1724_s30, %s1724_s30 }
  0x34   : > { %p1414_p0 = scmp.ne.s32.totalorder %s1724_s30, %s1413_s26  ;;  %p1422_p9 = scmp.lt.s32.totalorder %s1413_s26, %s1413_s26 }
  0x36   : > { %p1416_p2 = pnand %p1414_p0, %p1736_p8  ;;  %p1423_p4 = por %p1422_p9, %p1421_p7 }
  0x38   : > { %p1417_p5 = pneg %p1416_p2 }
  0x3a   : > { %p1424_p10 = pnand %p1423_p4, %p1417_p5 }
  0x3c   : > { %1427 = shalt.err (!%p1424_p10)
}
  0x3d   : > { %1272 = dma.hbm_to_vmem [thread:$0]  (!%p1720_p6), %s2091_s3, 256, %s1724_s30, [#allocation9], %s1625_s19, %s1625_s19, %s1626_s20  }
  0x3e   : > { %s1428_s8 = scalar_lea.hbm %s2090_s2, 16 }
  0x3f   : > { %p1429_p11 = scmp.ne.s32.totalorder %s2090_s2, %s1428_s8  ;;  %p1435_p0 = scmp.lt.u32.totalorder %s1428_s8, %s2090_s2 }
  0x41   : > { %p1431_p12 = pnand %p1429_p11, %p1736_p8 }
  0x43   : > { %p1432_p13 = pneg %p1431_p12 }
  0x45   : > { %p1437_p2 = pnand %p1435_p0, %p1432_p13 }
  0x47   : > { %1440 = shalt.err (!%p1437_p2)
}
  0x48   : > { %s1441_s30 = scalar_lea.vmem %s1726_s9, 16  ;;  %s1448_s19 = scalar_lea.vmem %s1726_s9, 32 }
  0x49   : > { %p1442_p5 = scmp.ne.s32.totalorder %s1726_s9, %s1441_s30  ;;  %p1449_p4 = scmp.lt.s32.totalorder %s1726_s9, %s1726_s9 }
  0x4a   : > { %p1450_p10 = scmp.lt.s32.totalorder %s1448_s19, %s1441_s30 }
  0x4b   : > { %p1444_p7 = pnand %p1442_p5, %p1736_p8 }
  0x4c   : > { %p1451_p11 = por %p1450_p10, %p1449_p4 }
  0x4d   : > { %p1445_p9 = pneg %p1444_p7 }
  0x4f   : > { %p1452_p12 = pnand %p1451_p11, %p1445_p9 }
  0x51   : > { %1455 = shalt.err (!%p1452_p12)
}
  0x52   : > { %1269 = dma.hbm_to_vmem [thread:$0]  (!%p1720_p6), %s2090_s2, 16, %s1726_s9, [#allocation6]  }
  0x53   : > { %s1627_s16 = smov [#allocation10]   ;;  %s1456_s25 = scalar_lea.hbm %s2092_s4, 16 }
  0x54   : > { %s245_s26 = sshll.u32 %s1627_s16, 4  ;;  %p1457_p13 = scmp.ne.s32.totalorder %s2092_s4, %s1456_s25  ;;  %s246_s26 = int_to_ptr.vmem [resolvable:$true] %s245_s26 }
  0x55   : > { %p1463_p5 = scmp.lt.u32.totalorder %s1456_s25, %s2092_s4 }
  0x56   : > { %p1459_p0 = pnand %p1457_p13, %p1736_p8 }
  0x58   : > { %p1460_p2 = pneg %p1459_p0 }
  0x5a   : > { %p1465_p7 = pnand %p1463_p5, %p1460_p2 }
  0x5c   : > { %1468 = shalt.err (!%p1465_p7)
}
  0x5d   : > { %s1469_s9 = scalar_lea.vmem %s246_s26, 16  ;;  %s1476_s12 = scalar_lea.vmem %s246_s26, 32 }
  0x5e   : > { %p1470_p9 = scmp.ne.s32.totalorder %s246_s26, %s1469_s9  ;;  %p1477_p11 = scmp.lt.s32.totalorder %s246_s26, %s246_s26 }
  0x5f   : > { %p1478_p12 = scmp.lt.s32.totalorder %s1476_s12, %s1469_s9 }
  0x60   : > { %p1472_p4 = pnand %p1470_p9, %p1736_p8 }
  0x61   : > { %p1479_p1 = por %p1478_p12, %p1477_p11 }
  0x62   : > { %p1473_p10 = pneg %p1472_p4 }
  0x64   : > { %p1480_p3 = pnand %p1479_p1, %p1473_p10 }
  0x66   : > { %1483 = shalt.err (!%p1480_p3)
}
  0x67   : > { %1275 = dma.hbm_to_vmem [thread:$0]  (!%p1720_p6), %s2092_s4, 16, %s246_s26, [#allocation9]  }
  0x68   : > { %s1111_s15 = sadd.s32 4294967294, %s1620_s24   ;;  %s1824_s7 = sadd.s32 1, %s1620_s24  }
  0x69   : > { %s32_s19 = ssub.s32 %s1620_s24, %s1824_s7  ;;  %s35_s20 = sadd.s32 1, %s1616_s23 }
  0x6a   : > { %p33_p1 = scmp.eq.s32.totalorder %s32_s19, 0  ;;  %p42_p3 = scmp.ne.s32.totalorder %s1616_s23, %s1612_s22 }
  0x6b   : > { %p43_p8 = scmp.eq.s32.totalorder %s1620_s24, 0  ;;  %p48_p13 = scmp.ne.s32.totalorder %s1612_s22, %s1608_s21 }
  0x6c   : > { %s1835_s14 = scalar_select %p33_p1, %s1616_s23, %s35_s20  }
  0x6d   : > { %p1837_p0 = por %p43_p8, %p42_p3  ;;  %p2102_p2 = scmp.eq.s32.totalorder %s1704_s27, 0 }
  0x6e   : > { %p156_p5 = scmp.eq.s32.totalorder %s1704_s27, 1  ;;  %p162_p7 = scmp.eq.s32.totalorder %s1111_s15, 1 }
  0x6f   : > { %p1843_p6 = por %p2102_p2, %p48_p13  ;;  %p1291_p9 = scmp.lt.s32.totalorder %s1620_s24, 2 }
  0x70   : > { %s256_s17 = sand.u32 1, %s1616_s23   ;;  %p1850_p4 = por %p156_p5, %p42_p3 }
  0x71   : > { %p1854_p10 = por %p162_p7, %p48_p13  ;;  %s1118_s29 = sshll.u32 %s256_s17, 3 }
  0x72   : > { %s2104_s18 = scalar_select %p1850_p4, 1, 0 }
  0x73   : > { %s2105_s25 = scalar_select %p1854_p10, 1, 0 }
  0x74   : > { %s1119_s8 = sshll.u32 %s1620_s24, 7  ;;  %s260_s12 = scalar_lea.vmem [#allocation2], %s1118_s29 }
  0x75   : > { %s1862_s9 = scalar_lea.hbm %s2088_s0, %s1119_s8  ;;  %s267_s13 = sshll.u32 %s260_s12, 4  ;;  %s1864_s13 = int_to_ptr.vmem [resolvable:$true] %s267_s13 }
  0x76   : > { %p1868_p11 = pnand %p1291_p9, %p1837_p0  ;;  %s257_s15 = scalar_lea.sflag [#allocation3], %s256_s17 }
  0x77   : > { %s1484_s19 = scalar_lea.hbm %s1862_s9, 128  ;;  %s1489_s8 = scalar_lea.hbm %s2088_s0, 256 }
  0x78   : > { %p1485_p12 = scmp.ne.s32.totalorder %s1862_s9, %s1484_s19  ;;  %p1486_p1 = pneg %p1868_p11 }
  0x79   : > { %p1490_p13 = scmp.lt.u32.totalorder %s1862_s9, %s2088_s0  ;;  %p1491_p0 = scmp.lt.u32.totalorder %s1489_s8, %s1484_s19 }
  0x7a   : > { %p1487_p3 = pnand %p1486_p1, %p1485_p12  ;;  %p1493_p5 = scmp.lt.u32.totalorder %s1484_s19, %s1862_s9 }
  0x7b   : > { %p1492_p2 = por %p1491_p0, %p1490_p13 }
  0x7c   : > { %p1488_p8 = pneg %p1487_p3 }
  0x7d   : > { %p1494_p7 = por %p1493_p5, %p1492_p2 }
  0x7f   : > { %p1495_p9 = pnand %p1494_p7, %p1488_p8 }
  0x81   : > { %1498 = shalt.err (!%p1495_p9)
}
  0x82   : > { %s1499_s17 = scalar_lea.vmem %s1864_s13, 128  ;;  %s1628_s11 = smov [#allocation2]  }
  0x83   : > { %p1500_p12 = scmp.ne.s32.totalorder %s1864_s13, %s1499_s17  ;;  %s1504_s12 = sshll.u32 %s1628_s11, 4  ;;  %s1505_s12 = int_to_ptr.vmem [resolvable:$false] %s1504_s12 }
  0x84   : > { %s1506_s20 = scalar_lea.vmem %s1505_s12, 256  ;;  %p1507_p4 = scmp.lt.s32.totalorder %s1864_s13, %s1505_s12 }
  0x85   : > { %p1502_p3 = pnand %p1500_p12, %p1486_p1  ;;  %p1508_p13 = scmp.lt.s32.totalorder %s1506_s20, %s1499_s17 }
  0x87   : > { %p1503_p10 = pneg %p1502_p3  ;;  %p1509_p0 = por %p1508_p13, %p1507_p4 }
  0x89   : > { %p1510_p2 = pnand %p1509_p0, %p1503_p10 }
  0x8b   : > { %1513 = shalt.err (!%p1510_p2)
}
  0x8c   : > { %1279 = dma.hbm_to_vmem [thread:$0]  (!%p1868_p11), %s1862_s9, 128, %s1864_s13, %s257_s15  }
  0x8d   : > { %p2107_p8 = scmp.ne.s32.totalorder %s2098_s28, 0 }
  0x8e   : > { %s1900_s19 = sand.u32 (!%p2107_p8), 1, %s1612_s22  }
  0x8f   : > { %276 = sbr.rel (%p2107_p8) target bundleno = 1654 (0x676), region = 40  ;;  %s1121_s29 = sshll.u32 (!%p2107_p8), %s1900_s19, 3 }
  0x90   : > { %s279_s8 = scalar_lea.sflag (!%p2107_p8), [#allocation3], %s1900_s19  ;;  %s282_s16 = scalar_lea.vmem (!%p2107_p8), [#allocation2], %s1121_s29 }
  0x96   : > { %1587 = dma.done.wait (%p1843_p6), %s279_s8, 128  }
  0x97   : > { %1589 = vsyncadd (%p1843_p6), %s279_s8, 4294967168  ;;  %p2108_p4 = scmp.eq.s32.totalorder %s1704_s27, 0 }
  0x99   : > { %1591 = dma.done.wait (%p2108_p4), [#allocation6], 272   ;;  %p2109_p10 = pmov %p2108_p4 }
  0x9a   : > { %p2110_p11 = pmov %p2108_p4 }
  0x9b   : > { %1593 = vsyncadd (%p2109_p10), [#allocation6], 4294967024 }
  0x9c   : > { %1595 = dma.done.wait (%p2110_p11), [#allocation9], 272   ;;  %p2111_p1 = pmov %p2108_p4 }
  0x9d   : > { %v1629_v0 = vmov 0.0   ;;  %vm1630_vm0 = vmmov 0   ;;  %v1352_v1 = vld [vmem:[#allocation5] sm:$0xff]   ;;  %v1353_v2 = vld [vmem:[#allocation5 + $0x8] sm:$0xff]   ;;  %v333_v3 = vld [vmem:[%s282_s16] sm:$0xff]  ;;  %vm358_vm1 = vcmask 261120  }
  0x9e   : > { %1597 = vsyncadd (%p2111_p1), [#allocation9], 4294967024  ;;  %1177 = vmatprep.subr.bf16.mxu0 %v1629_v0  ;;  %1181 = vmatprep.mubr.msk.bf16.mxu0 %vm1630_vm0, %v1629_v0  ;;  %v334_v4 = vpack.c.bf16 %v333_v3, %v333_v3  ;;  %v1128_v5 = vld [vmem:[#allocation7] ss:$0 sm:$0xff]  ;;  %s1631_s28 = smov 120   ;;  %s1632_s26 = smov 96  }
  0x9f   : > { %1185 = vmatprep.subr.bf16.mxu1 %v1629_v0  ;;  %1187 = vmatprep.mubr.msk.bf16.mxu1 %vm1630_vm0, %v1629_v0  ;;  %s1633_s9 = smov 80   ;;  %s1634_s13 = smov 88   ;;  %vm406_vm2 = vcmask 64512   ;;  %vm470_vm3 = vcmask 1043456   ;;  %vm864_vm4 = vcmask 130048   ;;  %vm866_vm5 = vcmask 195584  }
  0xa0   : > { %1178 = vmatpush3.bf16.msra.mxu0 %v1352_v1  ;;  %s1635_s30 = smov 72   ;;  %s1636_s15 = smov 112  }
  0xa1   : > { %1179 = vmatprep.subr.bf16.mxu0 %v1629_v0  ;;  %s1637_s10 = smov 104   ;;  %s1638_s17 = smov 56  }
  0xa2   : > { %s1639_s11 = smov 64   ;;  %s1640_s12 = smov 40  }
  0xa3   : > { %s1641_s20 = smov 48   ;;  %s1127_s8 = sshll.u32 %s1900_s19, 5 }
  0xa4   : > { %1180 = vmatpush3.bf16.msra.mxu0 %v1353_v2  ;;  %s1972_s16 = scalar_lea.vmem [#allocation12], %s1127_s8  ;;  %p2112_p5 = scmp.ne.s32.totalorder %s2104_s18, 0 }
  0xa5   : > { %1191 = vmatprep.subr.bf16.mxu0 %v1629_v0 }
  0xa7   : > { %1182 = vmatmul.mubr.msk.bf16.vlgmr.msra.gmra.mrb[0].mxu0 %vm358_vm1, %v334_v4 }
  0xa8   : > { %1193 = vmatprep.mubr.msk.bf16.mxu0 %vm1630_vm0, %v1629_v0 }
 0x17a   : > { %v396_v6 = vpop.f32.mrb[0].mxu0 }
 0x17b   : > { %v397_v7 = vadd.f32 %v1128_v5, %v396_v6  ;;  %v1183_v8 = vpop.f32.mrb[1].mxu0 }
 0x17c   : > { %v399_v9 = vpop.f32.mrb[2].mxu0 }
 0x17d   : > { %v1929_v10 = vpack.c.bf16 %v397_v7, %v397_v7  ;;  %v1184_v11 = vpop.f32.mrb[3].mxu0 }
 0x17f   : > { %515 = vrot.lane.b32.xlu1 %v1929_v10, %s1631_s28  ;;  %404 = vrot.lane.b32.xlu0 %v1929_v10, %s1632_s26  ;;  %s1642_s28 = smov 8   ;;  %s1643_s26 = smov 16  }
 0x183   : > { %629 = vrot.lane.b32.xlu1 %v1929_v10, %s1633_s9  ;;  %517 = vrot.lane.b32.xlu0 %v1929_v10, %s1634_s13  ;;  %s1644_s9 = smov 24   ;;  %s1154_s13 = sshll.u32 %s1704_s27, 9 }
 0x187   : > { %741 = vrot.lane.b32.xlu1 %v1929_v10, %s1635_s30  ;;  %627 = vrot.lane.b32.xlu0 %v1929_v10, %s1636_s15  ;;  %s968_s30 = sshll.u32 %s1972_s16, 4  ;;  %s2010_s30 = int_to_ptr.vmem [resolvable:$true] %s968_s30 }
 0x18b   : > { %739 = vrot.lane.b32.xlu0 %v1929_v10, %s1637_s10 }
 0x1f1   : > { %v405_v12 = vpop.permute.xlu0 %404  ;;  %v516_v15 = vpop.permute.xlu1 %515 }
 0x1f2   : > { %v411_v13 = vsel %vm406_vm2, %v405_v12, 0 }
 0x1f3   : > { %1186 = vmatpush3.bf16.xpose.msra.mxu1 %v411_v13 }
 0x1f4   : > { %1197 = vmatprep.subr.bf16.mxu1 %v1629_v0 }
 0x1f5   : > { %v518_v14 = vpop.permute.xlu0 %517  ;;  %v630_v17 = vpop.permute.xlu1 %629 }
 0x1f6   : > { %v523_v16 = vsel %vm406_vm2, %v518_v14, 0  ;;  %v635_v18 = vsel %vm406_vm2, %v630_v17, 0 }
 0x1f9   : > { %v742_v19 = vpop.permute.xlu1 %741  ;;  %v628_v20 = vpop.permute.xlu0 %627 }
 0x1fa   : > { %1188 = vmatmul.mubr.msk.bf16.vlgmr.msra.gmra.mrb[0].mxu1 %vm406_vm2, %v1929_v10  ;;  %v747_v21 = vsel %vm406_vm2, %v742_v19, 0 }
 0x1fb   : > { %1198 = vmatpush3.bf16.xpose.msra.mxu1 %v523_v16  ;;  %1199 = vmatprep.mubr.msk.bf16.mxu1 %vm1630_vm0, %v1629_v0 }
 0x1fc   : > { %1209 = vmatprep.subr.bf16.mxu1 %v1629_v0 }
 0x1fd   : > { %v740_v22 = vpop.permute.xlu0 %739 }
 0x202   : > { %1200 = vmatmul.mubr.msk.bf16.vlgmr.msra.gmra.mrb[4].mxu1 %vm406_vm2, %v516_v15 }
 0x203   : > { %1210 = vmatpush3.bf16.xpose.msra.mxu1 %v635_v18  ;;  %1211 = vmatprep.mubr.msk.bf16.mxu1 %vm1630_vm0, %v1629_v0 }
 0x204   : > { %1221 = vmatprep.subr.bf16.mxu1 %v1629_v0 }
 0x20a   : > { %1212 = vmatmul.mubr.msk.bf16.vlgmr.msra.gmra.mrb[8].mxu1 %vm406_vm2, %v628_v20 }
 0x20b   : > { %1222 = vmatpush3.bf16.xpose.msra.mxu1 %v747_v21  ;;  %1223 = vmatprep.mubr.msk.bf16.mxu1 %vm1630_vm0, %v1629_v0 }
 0x20c   : > { %1233 = vmatprep.subr.bf16.mxu1 %v1629_v0 }
 0x212   : > { %1224 = vmatmul.mubr.msk.bf16.vlgmr.msra.gmra.mrb[12].mxu1 %vm406_vm2, %v740_v22 }
 0x213   : > { %1237 = vmatprep.mubr.msk.bf16.mxu1 %vm1630_vm0, %v1629_v0 }
 0x2cd   : > { %v447_v23 = vpop.f32.mrb[0].mxu1 }
 0x2ce   : > { %v1189_v24 = vpop.f32.mrb[1].mxu1  ;;  %v453_v25 = vsel %vm406_vm2, %v447_v23, -inf }
 0x2cf   : > { %454 = vmax.xlane.f32.xlu1 %v453_v25  ;;  %v450_v26 = vpop.f32.mrb[2].mxu1 }
 0x2d0   : > { %v1190_v27 = vpop.f32.mrb[3].mxu1 }
 0x2d5   : > { %v559_v28 = vpop.f32.mrb[4].mxu1 }
 0x2d6   : > { %v1201_v29 = vpop.f32.mrb[5].mxu1  ;;  %v565_v30 = vsel %vm406_vm2, %v559_v28, -inf }
 0x2d7   : > { %566 = vmax.xlane.f32.xlu0 %v565_v30  ;;  %v562_v31 = vpop.f32.mrb[6].mxu1 }
 0x2d8   : > { %v1202_v32 = vpop.f32.mrb[7].mxu1 }
 0x2d9   : > { %v1354_v32 = vld [vmem:[#allocation8] sm:$0xff]  }
 0x2da   : > { %1234 = vmatpush3.bf16.msra.mxu1 %v1354_v32 }
 0x2db   : > { %1235 = vmatprep.subr.bf16.mxu1 %v1629_v0 }
 0x2dd   : > { %v671_v33 = vpop.f32.mrb[8].mxu1 }
 0x2de   : > { %v1213_v34 = vpop.f32.mrb[9].mxu1  ;;  %v677_v35 = vsel %vm406_vm2, %v671_v33, -inf }
 0x2df   : > { %678 = vmax.xlane.f32.xlu0 %v677_v35  ;;  %v674_v36 = vpop.f32.mrb[10].mxu1 }
 0x2e0   : > { %v1214_v37 = vpop.f32.mrb[11].mxu1 }
 0x2e5   : > { %v783_v38 = vpop.f32.mrb[12].mxu1 }
 0x2e6   : > { %v1225_v39 = vpop.f32.mrb[13].mxu1  ;;  %v789_v40 = vsel %vm406_vm2, %v783_v38, -inf }
 0x2e7   : > { %790 = vmax.xlane.f32.xlu1 %v789_v40  ;;  %v786_v41 = vpop.f32.mrb[14].mxu1 }
 0x2e8   : > { %v1226_v42 = vpop.f32.mrb[15].mxu1 }
 0x35c   : > { %v455_v43 = vpop.xlane.xlu1 %454 }
 0x35d   : > { %v456_v44 = vsub.f32 %v447_v23, %v455_v43 }
 0x35f   : > { %v457_v45 = vmul.f32 1.442695, %v456_v44 }
 0x361   : > { %1356 = vpow2.f32 %v457_v45 }
 0x364   : > { %v567_v46 = vpop.xlane.xlu0 %566 }
 0x365   : > { %v568_v47 = vsub.f32 %v559_v28, %v567_v46 }
 0x367   : > { %v569_v48 = vmul.f32 1.442695, %v568_v47 }
 0x369   : > { %1358 = vpow2.f32 %v569_v48 }
 0x36b   : > { %v1357_v49 = vpop.eup %1356 }
 0x36c   : > { %v679_v50 = vpop.xlane.xlu0 %678  ;;  %v459_v51 = vsel %vm406_vm2, %v1357_v49, 0.0 }
 0x36d   : > { %v680_v52 = vsub.f32 %v671_v33, %v679_v50  ;;  %460 = vadd.xlane.f32.xlu0 %v459_v51  ;;  %v1355_v33 = vld [vmem:[#allocation8 + $0x8] sm:$0xff]  }
 0x36e   : > { %1236 = vmatpush3.bf16.msra.mxu1 %v1355_v33 }
 0x36f   : > { %v681_v53 = vmul.f32 1.442695, %v680_v52 }
 0x371   : > { %1360 = vpow2.f32 %v681_v53 }
 0x373   : > { %v1359_v54 = vpop.eup %1358 }
 0x374   : > { %v571_v55 = vsel %vm406_vm2, %v1359_v54, 0.0  ;;  %v791_v58 = vpop.xlane.xlu1 %790 }
 0x375   : > { %572 = vadd.xlane.f32.xlu1 %v571_v55  ;;  %v792_v59 = vsub.f32 %v783_v38, %v791_v58 }
 0x377   : > { %v793_v60 = vmul.f32 1.442695, %v792_v59 }
 0x379   : > { %1362 = vpow2.f32 %v793_v60 }
 0x37b   : > { %v1361_v56 = vpop.eup %1360 }
 0x37c   : > { %v683_v57 = vsel %vm406_vm2, %v1361_v56, 0.0 }
 0x37d   : > { %684 = vadd.xlane.f32.xlu0 %v683_v57 }
 0x383   : > { %v1363_v61 = vpop.eup %1362 }
 0x384   : > { %v795_v62 = vsel %vm406_vm2, %v1363_v61, 0.0 }
 0x386   : > { %577 = vrot.lane.b32.xlu1 %v1929_v10, %s1638_s17  ;;  %s2008_s17 = scalar_lea.hbm %s2094_s6, %s1154_s13 }
 0x393   : > { %465 = vrot.lane.b32.xlu0 %v1929_v10, %s1639_s11  ;;  %s942_s11 = scalar_lea.sflag [#allocation13], %s1900_s19 }
 0x397   : > { %801 = vrot.lane.b32.xlu0 %v1929_v10, %s1640_s12  ;;  %s1514_s12 = scalar_lea.vmem %s2010_s30, 512 }
 0x398   : > { %p1515_p6 = scmp.ne.s32.totalorder %s2010_s30, %s1514_s12 }
 0x39a   : > { %p1516_p7 = pnand %p1515_p6, %p2112_p5 }
 0x39c   : > { %p1517_p9 = pneg %p1516_p7 }
 0x3aa   : > { %796 = vadd.xlane.f32.xlu1 %v795_v62 }
 0x3bb   : > { %689 = vrot.lane.b32.xlu1 %v1929_v10, %s1641_s20  ;;  %s1645_s20 = smov [#allocation12]  }
 0x3bc   : > { %s1518_s8 = sshll.u32 %s1645_s20, 4  ;;  %s1519_s8 = int_to_ptr.vmem [resolvable:$false] %s1518_s8 }
 0x3bd   : > { %p1521_p12 = scmp.lt.s32.totalorder %s2010_s30, %s1519_s8 }
 0x3fa   : > { %v461_v63 = vpop.xlane.xlu0 %460 }
 0x3fb   : > { %1364 = vrcp.f32 %v461_v63 }
 0x402   : > { %v573_v1 = vpop.xlane.xlu1 %572 }
 0x403   : > { %1366 = vrcp.f32 %v573_v1 }
 0x405   : > { %v1365_v2 = vpop.eup %1364 }
 0x406   : > { %v463_v3 = vmul.f32 %v1365_v2, %v1357_v49  ;;  %v578_v9 = vpop.permute.xlu1 %577 }
 0x407   : > { %v583_v11 = vsel %vm470_vm3, %v578_v9, 0 }
 0x408   : > { %514 = vst.msk [vmem:[%s1972_s16] sm:$0xff] %vm406_vm2, %v463_v3  ;;  %v464_v10 = vpack.c.bf16 %v463_v3, %v463_v3 }
 0x40a   : > { %v685_v4 = vpop.xlane.xlu0 %684 }
 0x40b   : > { %1368 = vrcp.f32 %v685_v4 }
 0x40d   : > { %v1367_v5 = vpop.eup %1366 }
 0x40e   : > { %v575_v6 = vmul.f32 %v1367_v5, %v1359_v54  ;;  %v466_v7 = vpop.permute.xlu0 %465 }
 0x40f   : > { %v472_v8 = vsel %vm470_vm3, %v466_v7, 0 }
 0x410   : > { %1136 = vst.msk [vmem:[%s1972_s16 + $0x8] sm:$0xff] %vm406_vm2, %v575_v6  ;;  %1192 = vmatpush3.bf16.msra.mxu0 %v472_v8  ;;  %v576_v14 = vpack.c.bf16 %v575_v6, %v575_v6 }
 0x411   : > { %1203 = vmatprep.subr.bf16.mxu0 %v1629_v0 }
 0x412   : > { %v802_v18 = vpop.permute.xlu0 %801 }
 0x413   : > { %1194 = vmatmul.mubr.msk.bf16.vlgmr.msra.gmra.mrb[4].mxu0 %vm406_vm2, %v464_v10  ;;  %v807_v20 = vsel %vm470_vm3, %v802_v18, 0 }
 0x414   : > { %1204 = vmatpush3.bf16.msra.mxu0 %v583_v11  ;;  %1205 = vmatprep.mubr.msk.bf16.mxu0 %vm1630_vm0, %v1629_v0 }
 0x415   : > { %v1369_v12 = vpop.eup %1368  ;;  %1215 = vmatprep.subr.bf16.mxu0 %v1629_v0 }
 0x416   : > { %v687_v13 = vmul.f32 %v1369_v12, %v1361_v56 }
 0x418   : > { %1139 = vst.msk [vmem:[%s1972_s16 + $0x10] sm:$0xff] %vm406_vm2, %v687_v13  ;;  %v688_v19 = vpack.c.bf16 %v687_v13, %v687_v13 }
 0x41b   : > { %1206 = vmatmul.mubr.msk.bf16.vlgmr.msra.gmra.mrb[8].mxu0 %vm406_vm2, %v576_v14 }
 0x41c   : > { %1217 = vmatprep.mubr.msk.bf16.mxu0 %vm1630_vm0, %v1629_v0 }
 0x437   : > { %v797_v15 = vpop.xlane.xlu1 %796 }
 0x438   : > { %1370 = vrcp.f32 %v797_v15 }
 0x43b   : > { %v690_v16 = vpop.permute.xlu1 %689 }
 0x43c   : > { %v695_v17 = vsel %vm470_vm3, %v690_v16, 0 }
 0x43d   : > { %1216 = vmatpush3.bf16.msra.mxu0 %v695_v17 }
 0x43e   : > { %1227 = vmatprep.subr.bf16.mxu0 %v1629_v0 }
 0x440   : > { %1218 = vmatmul.mubr.msk.bf16.vlgmr.msra.gmra.mrb[12].mxu0 %vm406_vm2, %v688_v19 }
 0x441   : > { %1228 = vmatpush3.bf16.msra.mxu0 %v807_v20  ;;  %1229 = vmatprep.mubr.msk.bf16.mxu0 %vm1630_vm0, %v1629_v0 }
 0x442   : > { %v1371_v21 = vpop.eup %1370 }
 0x443   : > { %v799_v22 = vmul.f32 %v1371_v21, %v1363_v61 }
 0x445   : > { %1142 = vst.msk [vmem:[%s1972_s16 + $0x18] sm:$0xff] %vm406_vm2, %v799_v22  ;;  %v800_v23 = vpack.c.bf16 %v799_v22, %v799_v22  ;;  %s1520_s16 = scalar_lea.vmem %s1519_s8, 1024 }
 0x446   : > { %p1522_p3 = scmp.lt.s32.totalorder %s1520_s16, %s1514_s12 }
 0x448   : > { %1230 = vmatmul.mubr.msk.bf16.vlgmr.msra.gmra.mrb[16].mxu0 %vm406_vm2, %v800_v23  ;;  %p1523_p13 = por %p1522_p3, %p1521_p12 }
 0x44a   : > { %p1524_p0 = pnand %p1523_p13, %p1517_p9 }
 0x4e6   : > { %v508_v24 = vpop.f32.mrb[4].mxu0 }
 0x4e7   : > { %v1195_v25 = vpop.f32.mrb[5].mxu0 }
 0x4e8   : > { %v511_v26 = vpop.f32.mrb[6].mxu0 }
 0x4e9   : > { %v1196_v27 = vpop.f32.mrb[7].mxu0 }
 0x4ee   : > { %v619_v28 = vpop.f32.mrb[8].mxu0 }
 0x4ef   : > { %852 = vrot.lane.b32.xlu1 %v619_v28, %s1642_s28  ;;  %v1207_v29 = vpop.f32.mrb[9].mxu0 }
 0x4f0   : > { %v622_v30 = vpop.f32.mrb[10].mxu0 }
 0x4f1   : > { %v1208_v31 = vpop.f32.mrb[11].mxu0 }
 0x513   : > { %v731_v34 = vpop.f32.mrb[12].mxu0 }
 0x514   : > { %856 = vrot.lane.b32.xlu0 %v731_v34, %s1643_s26  ;;  %v1219_v35 = vpop.f32.mrb[13].mxu0 }
 0x515   : > { %v734_v36 = vpop.f32.mrb[14].mxu0 }
 0x516   : > { %v1220_v37 = vpop.f32.mrb[15].mxu0 }
 0x51b   : > { %v843_v38 = vpop.f32.mrb[16].mxu0 }
 0x51c   : > { %860 = vrot.lane.b32.xlu1 %v843_v38, %s1644_s9  ;;  %v1231_v39 = vpop.f32.mrb[17].mxu0 }
 0x51d   : > { %v846_v40 = vpop.f32.mrb[18].mxu0 }
 0x51e   : > { %v1232_v41 = vpop.f32.mrb[19].mxu0 }
 0x561   : > { %v853_v42 = vpop.permute.xlu1 %852 }
 0x562   : > { %v863_v43 = vsel %vm406_vm2, %v508_v24, %v853_v42 }
 0x586   : > { %v857_v0 = vpop.permute.xlu0 %856 }
 0x587   : > { %v865_v44 = vsel %vm864_vm4, %v863_v43, %v857_v0 }
 0x58e   : > { %v861_v45 = vpop.permute.xlu1 %860 }
 0x58f   : > { %v867_v46 = vsel %vm866_vm5, %v865_v44, %v861_v45 }
 0x590   : > { %v868_v47 = vpack.c.bf16 %v867_v46, %v867_v46 }
 0x592   : > { %1238 = vmatmul.mubr.msk.bf16.vlgmr.msra.gmra.mrb[16].mxu1 %vm358_vm1, %v868_v47 }
 0x593   : > { %1527 = shalt.err (!%p1524_p0)
}
 0x594   : > { %s1528_s26 = scalar_lea.hbm %s2008_s17, 512  ;;  %s1532_s15 = scalar_lea.hbm %s2094_s6, 1024 }
 0x595   : > { %p1529_p2 = scmp.ne.s32.totalorder %s2008_s17, %s1528_s26  ;;  %p1533_p10 = scmp.lt.u32.totalorder %s2008_s17, %s2094_s6 }
 0x596   : > { %p1534_p11 = scmp.lt.u32.totalorder %s1532_s15, %s1528_s26  ;;  %p1536_p6 = scmp.lt.u32.totalorder %s1528_s26, %s2008_s17 }
 0x597   : > { %p1530_p8 = pnand %p1529_p2, %p2112_p5 }
 0x598   : > { %p1535_p1 = por %p1534_p11, %p1533_p10 }
 0x599   : > { %p1531_p4 = pneg %p1530_p8 }
 0x59a   : > { %p1537_p7 = por %p1536_p6, %p1535_p1 }
 0x59c   : > { %p1538_p9 = pnand %p1537_p7, %p1531_p4 }
 0x59e   : > { %1541 = shalt.err (!%p1538_p9)
}
 0x59f   : > { %s1646_s12 = smov 128   ;;  %v1143_v48 = vld [vmem:[#allocation10] ss:$0 sm:$0xff]  ;;  %s1149_s8 = sshll.u32 %s1704_s27, 7 }
 0x5a0   : > { %1260 = dma.vmem_to_hbm [thread:$0]  (%p2112_p5), %s2010_s30, 512, %s2008_s17, %s942_s11, %s1646_s12, %s1646_s12, %s1642_s28  }
 0x5a1   : > { %s324_s16 = scalar_lea.vmem [#allocation11], %s1121_s29  ;;  %s2043_s15 = scalar_lea.hbm %s2093_s5, %s1149_s8 }
 0x5a2   : > { %s955_s26 = sshll.u32 %s324_s16, 4  ;;  %s937_s27 = scalar_lea.sflag [#allocation4], %s1900_s19  ;;  %s2045_s26 = int_to_ptr.vmem [resolvable:$true] %s955_s26 }
 0x5a3   : > { %s1542_s29 = scalar_lea.vmem %s2045_s26, 128  ;;  %s1647_s28 = smov [#allocation11]  }
 0x5a4   : > { %p1543_p12 = scmp.ne.s32.totalorder %s2045_s26, %s1542_s29  ;;  %s1546_s30 = sshll.u32 %s1647_s28, 4  ;;  %s1547_s30 = int_to_ptr.vmem [resolvable:$false] %s1546_s30 }
 0x5a5   : > { %s1548_s17 = scalar_lea.vmem %s1547_s30, 256  ;;  %p1549_p0 = scmp.lt.s32.totalorder %s2045_s26, %s1547_s30 }
 0x5a6   : > { %p1544_p3 = pnand %p1543_p12, %p2112_p5  ;;  %p1550_p2 = scmp.lt.s32.totalorder %s1548_s17, %s1542_s29 }
 0x5a8   : > { %p1545_p13 = pneg %p1544_p3  ;;  %p1551_p8 = por %p1550_p2, %p1549_p0 }
 0x5aa   : > { %p1552_p4 = pnand %p1551_p8, %p1545_p13 }
 0x665   : > { %v929_v49 = vpop.f32.mrb[16].mxu1 }
 0x666   : > { %v930_v50 = vadd.f32 %v1143_v48, %v929_v49  ;;  %v1239_v51 = vpop.f32.mrb[17].mxu1 }
 0x667   : > { %v932_v52 = vpop.f32.mrb[18].mxu1 }
 0x668   : > { %v1240_v53 = vpop.f32.mrb[19].mxu1  ;;  %935 = vst.msk [vmem:[%s324_s16] sm:$0xff] %vm358_vm1, %v930_v50 }
 0x669   : > { %1555 = shalt.err (!%p1552_p4)
}
 0x66a   : > { %s1556_s19 = scalar_lea.hbm %s2043_s15, 128  ;;  %s1560_s20 = scalar_lea.hbm %s2093_s5, 256 }
 0x66b   : > { %p1557_p10 = scmp.ne.s32.totalorder %s2043_s15, %s1556_s19  ;;  %p1561_p6 = scmp.lt.u32.totalorder %s2043_s15, %s2093_s5 }
 0x66c   : > { %p1562_p7 = scmp.lt.u32.totalorder %s1560_s20, %s1556_s19  ;;  %p1564_p12 = scmp.lt.u32.totalorder %s1556_s19, %s2043_s15 }
 0x66d   : > { %p1558_p11 = pnand %p1557_p10, %p2112_p5 }
 0x66e   : > { %p1563_p9 = por %p1562_p7, %p1561_p6 }
 0x66f   : > { %p1559_p1 = pneg %p1558_p11 }
 0x670   : > { %p1565_p3 = por %p1564_p12, %p1563_p9 }
 0x672   : > { %p1566_p13 = pnand %p1565_p3, %p1559_p1 }
 0x674   : > { %1569 = shalt.err (!%p1566_p13)
}
 0x675   : > { %1259 = dma.vmem_to_hbm [thread:$0]  (%p2112_p5), %s2045_s26, 128, %s2043_s15, %s937_s27  }
 0x676 PF: > { %s983_s16 = sand.u32 1, %s1608_s21   ;;  %p2113_p0 = scmp.ne.s32.totalorder %s2105_s25, 0 }
 0x677   : > { %p2114_p2 = scmp.ge.s32.totalorder %s1620_s24, 2  ;;  %s984_s9 = scalar_lea.sflag [#allocation4], %s983_s16 }
 0x679   : > { %p1281_p8 = pnand %p2114_p2, %p2113_p0 }
 0x67b   : > { %1599 = dma.done.wait (!%p1281_p8), %s984_s9, 128  }
 0x67c   : > { %1601 = vsyncadd (!%p1281_p8), %s984_s9, 4294967168  ;;  %s993_s13 = scalar_lea.sflag [#allocation13], %s983_s16 }
 0x67d   : > { %1603 = dma.done.wait (!%p1281_p8), %s993_s13, 512  }
 0x67e   : > { %1605 = vsyncadd (!%p1281_p8), %s993_s13, 4294966784  ;;  %p25_p5 = scmp.ge.s32.totalorder %s1824_s7, 4   ;;  %s2115_s21 = smov %s1612_s22 }
 0x67f   : > { %s2116_s22 = smov %s1616_s23  ;;  %s2117_s23 = smov %s1835_s14 }
 0x680   : > { %s2118_s24 = smov %s1824_s7  ;;  %27 = sbr.rel (!%p25_p5) target bundleno = 9 (0x9), region = 121 }
 0x687   :  { %998 = vsyncpa [#allocation3], 1 }
 0x688   :  { %1000 = vsyncpa [#allocation3 + $0x1], 1 }
 0x689   :  { %1001 = vsyncpa [#allocation6], 1 }
 0x68a   :  { %1002 = vsyncpa [#allocation9], 1 }
 0x68b   :  { %1003 = vsyncpa [#allocation4], 1 }
 0x68c   :  { %1005 = vsyncpa [#allocation4 + $0x1], 1 }
 0x68d   :  { %1006 = vsyncpa [#allocation13], 1 }
 0x68e   :  { %1008 = vsyncpa [#allocation13 + $0x1], 1 }

</bundles_post_ra>
